<compile_context>
chip_gen: v7x
topology: tpu7x:2x2x1
jax: 0.10.0
libtpu: 0.0.40
codegen_flags: <defaults>
</compile_context>

<pallas_src>
import jax
import jax.numpy as jnp
from jax.experimental import pallas as pl
from jax.experimental.pallas import tpu as pltpu

EPS = 1e-5
LANE = 128  # TPU lane width: keep the stored output's last dim a multiple of this


def img_adapter_kernel(x_ref, w1_ref, b1_ref, w2_ref, gamma_ref, beta_ref, o_ref):
    # fc1 + ReLU  (MXU matmul, f32 accumulation)
    h = jnp.dot(x_ref[...], w1_ref[...], preferred_element_type=jnp.float32)
    h = jnp.maximum(h + b1_ref[...], 0.0)            # (N, H) + (1, H)

    # fc2 — bias intentionally omitted: it cancels under BN mean subtraction.
    y = jnp.dot(h, w2_ref[...], preferred_element_type=jnp.float32)  # (N, Dp)

    # BatchNorm1d (training mode: batch statistics, biased variance),
    # folded into a single scale/shift per element.
    mean = jnp.mean(y, axis=0, keepdims=True)        # (1, Dp)
    centered = y - mean
    var = jnp.mean(centered * centered, axis=0, keepdims=True)
    scale = gamma_ref[...] * jax.lax.rsqrt(var + EPS)  # (1, Dp)
    o_ref[...] = centered * scale + beta_ref[...]      # lane-dense store


def img_adapter(x, w1, b1, w2, b2, gamma, beta):
    """x:(N,D_in), w1:(D_in,H), b1:(H,), w2:(H,D_out), b2:(D_out,),
    gamma/beta:(D_out,).  b2 is accepted for API parity but unused: adding a
    constant per-feature bias before training-mode BatchNorm is a no-op."""
    del b2
    n, _ = x.shape
    d_out = w2.shape[1]

    # Pad the output feature axis up to a multiple of 128 lanes so the kernel's
    # output store is unmasked/lane-dense; slice the padding off afterwards.
    d_pad = max(LANE, ((d_out + LANE - 1) // LANE) * LANE)
    pad = d_pad - d_out
    w2p = jnp.pad(w2, ((0, 0), (0, pad)))
    gammap = jnp.pad(gamma, (0, pad)).reshape(1, -1)
    betap = jnp.pad(beta, (0, pad)).reshape(1, -1)

    out = pl.pallas_call(
        img_adapter_kernel,
        out_shape=jax.ShapeDtypeStruct((n, d_pad), jnp.float32),
        in_specs=[pl.BlockSpec(memory_space=pltpu.MemorySpace.VMEM)] * 6,
        out_specs=pl.BlockSpec(memory_space=pltpu.MemorySpace.VMEM),
    )(x, w1, b1.reshape(1, -1), w2p, gammap, betap)
    return out[:, :d_out]


def reference(x, w1, b1, w2, b2, gamma, beta):
    h = jnp.maximum(x @ w1 + b1, 0.0)
    y = h @ w2 + b2
    mean = y.mean(axis=0)
    var = ((y - mean) ** 2).mean(axis=0)
    return gamma * (y - mean) / jnp.sqrt(var + EPS) + beta


if __name__ == "__main__":
    # Small shapes consistent with the module: ImgAdapter(input_dim=64,
    # hidden_dim=[32], output_dim=16), batch N=8.
    N, D_IN, H, D_OUT = 8, 64, 32, 16

    key = jax.random.PRNGKey(0)
    kx, kw1, kb1, kw2, kb2, kg, kb = jax.random.split(key, 7)

    x = jax.random.normal(kx, (N, D_IN), dtype=jnp.float32)

    # PyTorch Linear stores (out, in); here we keep the transposed (in, out)
    # layout for direct row-major matmul on the MXU.
    w1 = jax.random.normal(kw1, (D_IN, H), dtype=jnp.float32) * 0.05
    b1 = jax.random.normal(kb1, (H,), dtype=jnp.float32) * 0.05
    w2 = jax.random.normal(kw2, (H, D_OUT), dtype=jnp.float32) * 0.05
    b2 = jax.random.normal(kb2, (D_OUT,), dtype=jnp.float32) * 0.05
    gamma = 1.0 + 0.1 * jax.random.normal(kg, (D_OUT,), dtype=jnp.float32)
    beta = 0.1 * jax.random.normal(kb, (D_OUT,), dtype=jnp.float32)

    out = img_adapter(x, w1, b1, w2, b2, gamma, beta)
    out = jax.block_until_ready(out)

    ref = reference(x, w1, b1, w2, b2, gamma, beta)
    assert out.shape == (N, D_OUT)
    assert jnp.allclose(out, ref, atol=1e-4, rtol=1e-4), "mismatch vs reference"

    print("KERNEL_OK")
</pallas_src>

<mosaic_0001>
module attributes {stable_mosaic.version = 11 : i64} {
  func.func @img_adapter_kernel(%arg0: memref<8x64xf32, #tpu.memory_space<vmem>>, %arg1: memref<64x32xf32, #tpu.memory_space<vmem>>, %arg2: memref<1x32xf32, #tpu.memory_space<vmem>>, %arg3: memref<32x128xf32, #tpu.memory_space<vmem>>, %arg4: memref<1x128xf32, #tpu.memory_space<vmem>>, %arg5: memref<1x128xf32, #tpu.memory_space<vmem>>, %arg6: memref<8x128xf32, #tpu.memory_space<vmem>>) attributes {dimension_semantics = [], scalar_prefetch = 0 : i64, scratch_operands = 0 : i64, tpu.core_type = #tpu.core_type<tc>} {
    %c0 = arith.constant 0 : index
    %c0_0 = arith.constant 0 : index
    %0 = vector.load %arg0[%c0, %c0_0] : memref<8x64xf32, #tpu.memory_space<vmem>>, vector<8x64xf32>
    %c0_1 = arith.constant 0 : index
    %c0_2 = arith.constant 0 : index
    %1 = vector.load %arg1[%c0_1, %c0_2] : memref<64x32xf32, #tpu.memory_space<vmem>>, vector<64x32xf32>
    %cst = arith.constant dense<0.000000e+00> : vector<8x32xf32>
    %2 = tpu.matmul %0, %1, %cst {dimension_numbers = #tpu.dot_dimension_numbers<[1], [0], [0], [1], [0, 0, 1, 1], [], []>} : vector<8x64xf32>, vector<64x32xf32>, vector<8x32xf32> -> vector<8x32xf32>
    %c0_3 = arith.constant 0 : index
    %c0_4 = arith.constant 0 : index
    %3 = vector.load %arg2[%c0_3, %c0_4] : memref<1x32xf32, #tpu.memory_space<vmem>>, vector<1x32xf32>
    %4 = vector.broadcast %3 : vector<1x32xf32> to vector<8x32xf32>
    %5 = arith.addf %2, %4 : vector<8x32xf32>
    %cst_5 = arith.constant 0.000000e+00 : f32
    %6 = vector.broadcast %cst_5 : f32 to vector<8x32xf32>
    %7 = arith.maximumf %5, %6 : vector<8x32xf32>
    %c0_6 = arith.constant 0 : index
    %c0_7 = arith.constant 0 : index
    %8 = vector.load %arg3[%c0_6, %c0_7] : memref<32x128xf32, #tpu.memory_space<vmem>>, vector<32x128xf32>
    %cst_8 = arith.constant dense<0.000000e+00> : vector<8x128xf32>
    %9 = tpu.matmul %7, %8, %cst_8 {dimension_numbers = #tpu.dot_dimension_numbers<[1], [0], [0], [1], [0, 0, 1, 1], [], []>} : vector<8x32xf32>, vector<32x128xf32>, vector<8x128xf32> -> vector<8x128xf32>
    %cst_9 = arith.constant dense<0.000000e+00> : vector<128xf32>
    %10 = vector.multi_reduction <add>, %9, %cst_9 [0] : vector<8x128xf32> to vector<128xf32>
    %11 = vector.shape_cast %10 : vector<128xf32> to vector<1x128xf32>
    %cst_10 = arith.constant 8.000000e+00 : f32
    %12 = vector.broadcast %cst_10 : f32 to vector<1x128xf32>
    %13 = arith.divf %11, %12 : vector<1x128xf32>
    %14 = vector.broadcast %13 : vector<1x128xf32> to vector<8x128xf32>
    %15 = arith.subf %9, %14 : vector<8x128xf32>
    %16 = arith.mulf %15, %15 : vector<8x128xf32>
    %cst_11 = arith.constant dense<0.000000e+00> : vector<128xf32>
    %17 = vector.multi_reduction <add>, %16, %cst_11 [0] : vector<8x128xf32> to vector<128xf32>
    %18 = vector.shape_cast %17 : vector<128xf32> to vector<1x128xf32>
    %cst_12 = arith.constant 8.000000e+00 : f32
    %19 = vector.broadcast %cst_12 : f32 to vector<1x128xf32>
    %20 = arith.divf %18, %19 : vector<1x128xf32>
    %c0_13 = arith.constant 0 : index
    %c0_14 = arith.constant 0 : index
    %21 = vector.load %arg4[%c0_13, %c0_14] : memref<1x128xf32, #tpu.memory_space<vmem>>, vector<1x128xf32>
    %cst_15 = arith.constant 9.99999974E-6 : f32
    %22 = vector.broadcast %cst_15 : f32 to vector<1x128xf32>
    %23 = arith.addf %20, %22 : vector<1x128xf32>
    %24 = math.rsqrt %23 : vector<1x128xf32>
    %25 = arith.mulf %21, %24 : vector<1x128xf32>
    %26 = vector.broadcast %25 : vector<1x128xf32> to vector<8x128xf32>
    %27 = arith.mulf %15, %26 : vector<8x128xf32>
    %c0_16 = arith.constant 0 : index
    %c0_17 = arith.constant 0 : index
    %28 = vector.load %arg5[%c0_16, %c0_17] : memref<1x128xf32, #tpu.memory_space<vmem>>, vector<1x128xf32>
    %29 = vector.broadcast %28 : vector<1x128xf32> to vector<8x128xf32>
    %30 = arith.addf %27, %29 : vector<8x128xf32>
    %c0_18 = arith.constant 0 : index
    %c0_19 = arith.constant 0 : index
    %31 = vector.load %arg6[%c0_18, %c0_19] : memref<8x128xf32, #tpu.memory_space<vmem>>, vector<8x128xf32>
    tpu.vector_store %arg6[%c0_18, %c0_19], %30 {strides = array<i32>} : memref<8x128xf32, #tpu.memory_space<vmem>>, vector<8x128xf32>,
    return
  }
}

</mosaic_0001>

<bundles_post_ra>
// kernel: tpu_custom_call.1
= control target key start
LH: loop header
LB: loop body
LE: loop exit
PB: predicated region body
PF: predicated region fallthrough
CT: control target
= control target key end

     0   :  { %v340_v3 = vmov 0.0|0.0   ;;  %vm341_vm0 = vmmov 0   ;;  %v342_v6 = vmov 0.0   ;;  %s439_s0 = inlined_call_operand.vmem [shape: f32[8,64], index: 0, kind: input, shape index: {}]   ;;  %s440_s1 = inlined_call_operand.vmem [shape: f32[64,32], index: 1, kind: input, shape index: {}]   ;;  %s441_s2 = inlined_call_operand.vmem [shape: f32[1,32], index: 2, kind: input, shape index: {}]   ;;  %s442_s3 = inlined_call_operand.vmem [shape: f32[32,128], index: 3, kind: input, shape index: {}]   ;;  %s443_s4 = inlined_call_operand.vmem [shape: f32[1,128], index: 4, kind: input, shape index: {}]   ;;  %s444_s5 = inlined_call_operand.vmem [shape: f32[1,128], index: 5, kind: input, shape index: {}]   ;;  %s445_s6 = inlined_call_operand.hbm [shape: f32[8,128], index: 6, kind: output, shape index: {}]  }
   0x1   :  { %v25_v0 = vld [vmem:[%s440_s1] sm:$0xff]  ;;  %v26_v1 = vld [vmem:[%s440_s1 + $0x8] sm:$0xff]  ;;  %v27_v2 = vld [vmem:[%s440_s1 + $0x10] sm:$0xff]  ;;  %292 = vmatprep.subr.bf16.mxu0 %v340_v3  ;;  %278 = vmatprep.mubr.msk.f32.mxu0 %vm341_vm0, %v342_v6 }
   0x2   :  { %v293_v4 = vpack.c.bf16 %v26_v1, %v25_v0  ;;  %v28_v5 = vld [vmem:[%s440_s1 + $0x18] sm:$0xff]  ;;  %304 = vmatprep.subr.bf16.mxu1 %v340_v3  ;;  %289 = vmatprep.mubr.msk.f32.mxu1 %vm341_vm0, %v342_v6  ;;  %v115_v8 = vld [vmem:[%s442_s3] sm:$0xff]  ;;  %v116_v9 = vld [vmem:[%s442_s3 + $0x8] sm:$0xff] }
   0x3   :  { %v296_v7 = vpack.c.bf16 %v28_v5, %v27_v2  ;;  %v29_v10 = vld [vmem:[%s440_s1 + $0x20] sm:$0xff]  ;;  %v30_v11 = vld [vmem:[%s440_s1 + $0x28] sm:$0xff]  ;;  %v305_v12 = vpack.c.bf16 %v116_v9, %v115_v8 }
   0x4   :  { %294 = vmatpush3.bf16.msra.mxu0 %v293_v4 }
   0x5   :  { %295 = vmatprep.subr.bf16.mxu0 %v340_v3 }
   0x6   :  { %11 = vsyncpa [#allocation3], 0  ;;  %306 = vmatpush3.bf16.msra.mxu1 %v305_v12  ;;  %v299_v13 = vpack.c.bf16 %v30_v11, %v29_v10  ;;  %v31_v14 = vld [vmem:[%s440_s1 + $0x30] sm:$0xff]  ;;  %v32_v15 = vld [vmem:[%s440_s1 + $0x38] sm:$0xff]  ;;  %vm40_vm1 = vcmask 523264   ;;  %vm119_vm2 = vcmask 261120   ;;  %v215_v45 = vlaneseq }
   0x7   :  { %307 = vmatprep.subr.bf16.mxu1 %v340_v3  ;;  %v302_v16 = vpack.c.bf16 %v32_v15, %v31_v14  ;;  %v24_v17 = vld [vmem:[%s439_s0] sm:$0xff]  ;;  %v117_v18 = vld [vmem:[%s442_s3 + $0x10] sm:$0xff]  ;;  %v118_v19 = vld [vmem:[%s442_s3 + $0x18] sm:$0xff]  ;;  %s343_s25 = smov [#allocation2]  }
   0x8   :  { %297 = vmatpush3.bf16.msra.mxu0 %v296_v7  ;;  %v308_v20 = vpack.c.bf16 %v118_v19, %v117_v18  ;;  %v244_v21 = vld [vmem:[%s441_s2] ss:$0 sm:$0xff]  ;;  %v216_v46 = vshrl.u32 %v215_v45, 7  ;;  %s236_s26 = sshll.u32 %s343_s25, 4  ;;  %s237_s26 = int_to_ptr.vmem [resolvable:$true] %s236_s26 }
   0x9   :  { %298 = vmatprep.subr.bf16.mxu0 %v340_v3  ;;  %v210_v47 = vld [vmem:[%s443_s4] sm:$0x1]  ;;  %s316_s27 = scalar_lea.vmem %s237_s26, 128  ;;  %p321_p1 = scmp.lt.s32.totalorder %s237_s26, %s237_s26 }
   0xa   :  { %309 = vmatpush3.bf16.msra.mxu1 %v308_v20  ;;  %v217_v48 = vsub.s32 0, %v216_v46  ;;  %v247_v52 = vld [vmem:[%s444_s5] ss:$0 sm:$0xff]  ;;  %p317_p0 = scmp.ne.s32.totalorder %s237_s26, %s316_s27  ;;  %p322_p2 = scmp.lt.s32.totalorder %s316_s27, %s316_s27 }
   0xc   :  { %300 = vmatpush3.bf16.msra.mxu0 %v299_v13  ;;  %p323_p3 = por %p322_p2, %p321_p1 }
   0xd   :  { %301 = vmatprep.subr.bf16.mxu0 %v340_v3 }
   0xe   :  { %p324_p4 = pnand %p323_p3, %p317_p0 }
  0x10   :  { %303 = vmatpush3.bf16.msra.mxu0 %v302_v16 }
  0x13   :  { %279 = vmatmul.mubr.msk.f32.vlgmr.msra.gmra.mrb[0].mxu0 %vm40_vm1, %v24_v17 }
  0xe6   :  { %v110_v22 = vpop.f32.mrb[0].mxu0 }
  0xe7   :  { %v111_v23 = vadd.f32 %v244_v21, %v110_v22  ;;  %v280_v24 = vpop.f32.mrb[1].mxu0 }
  0xe9   :  { %v114_v25 = vmax.f32 %v111_v23, 0.0 }
  0xeb   :  { %290 = vmatmul.mubr.msk.f32.vlgmr.msra.gmra.mrb[0].mxu1 %vm119_vm2, %v114_v25 }
 0x1be   :  { %v189_v26 = vpop.f32.mrb[0].mxu1 }
 0x1bf   :  { %v193_v27 = vrot.slane %v189_v26, 4  ;;  %v291_v28 = vpop.f32.mrb[1].mxu1 }
 0x1c1   :  { %v194_v29 = vadd.f32 %v193_v27, %v189_v26 }
 0x1c3   :  { %v195_v30 = vrot.slane %v194_v29, 2 }
 0x1c5   :  { %v196_v31 = vadd.f32 %v195_v30, %v194_v29 }
 0x1c7   :  { %v197_v32 = vrot.slane %v196_v31, 1 }
 0x1c9   :  { %v198_v33 = vadd.f32 %v197_v32, %v196_v31 }
 0x1cb   :  { %v200_v34 = vmul.f32 0.125, %v198_v33 }
 0x1cd   :  { %v201_v35 = vsub.f32 %v189_v26, %v200_v34 }
 0x1cf   :  { %v202_v36 = vmul.f32 %v201_v35, %v201_v35 }
 0x1d1   :  { %v203_v37 = vrot.slane %v202_v36, 4 }
 0x1d3   :  { %v204_v38 = vadd.f32 %v203_v37, %v202_v36 }
 0x1d5   :  { %v205_v39 = vrot.slane %v204_v38, 2 }
 0x1d7   :  { %v206_v40 = vadd.f32 %v205_v39, %v204_v38 }
 0x1d9   :  { %v207_v41 = vrot.slane %v206_v40, 1 }
 0x1db   :  { %v208_v42 = vadd.f32 %v207_v41, %v206_v40 }
 0x1dd   :  { %v209_v43 = vmul.f32 0.125, %v208_v42 }
 0x1df   :  { %v211_v44 = vadd.f32 1e-05, %v209_v43 }
 0x1e1   :  { %314 = vrsqrt.f32 %v211_v44 }
 0x1eb   :  { %v315_v49 = vpop.eup %314 }
 0x1ec   :  { %v213_v50 = vmul.f32 %v315_v49, %v210_v47 }
 0x1ee   :  { %v218_v51 = vrot.slane %v213_v50, %v217_v48 }
 0x1f0   :  { %v220_v53 = vmul.f32 %v218_v51, %v201_v35 }
 0x1f2   :  { %v228_v54 = vadd.f32 %v247_v52, %v220_v53 }
 0x1f4   :  { %229 = vst [vmem:[#allocation2] sm:$0xff] %v228_v54 }
 0x1f5   :  { %327 = shalt.err (!%p324_p4)
}
 0x1f6   :  { %s328_s29 = scalar_lea.hbm %s445_s6, 128 }
 0x1f7   :  { %p329_p5 = scmp.ne.s32.totalorder %s445_s6, %s328_s29  ;;  %p332_p6 = scmp.lt.u32.totalorder %s328_s29, %s445_s6 }
 0x1f9   :  { %p334_p7 = pnand %p332_p6, %p329_p5 }
 0x1fb   :  { %337 = shalt.err (!%p334_p7)
}
 0x1fc   :  { %239 = dma.vmem_to_hbm [thread:$0]  %s237_s26, 128, %s445_s6, [#allocation3]  }
 0x1fd   :  { %338 = dma.done.wait [#allocation3], 128  }
 0x1fe   :  { %339 = vsyncadd [#allocation3], 4294967168 }
 0x1ff   :  { %243 = vsyncpa [#allocation3], 1 }

</bundles_post_ra>
